<compile_context>
chip_gen: v5e
topology: v5e:2x2
jax: 0.10.0
libtpu: 0.0.40
codegen_flags: <defaults>
</compile_context>

<pallas_src>
import functools

import jax
import jax.numpy as jnp
from jax.experimental import pallas as pl
from jax.experimental.pallas import tpu as pltpu


def _round_up(x, m):
    return (x + m - 1) // m * m


def _vmem_capacity_bytes():
    """Physical VMEM of the attached TPU (fallback 64 MiB = v7x per-TC)."""
    try:
        return int(pltpu.get_tpu_info().vmem_capacity_bytes)
    except Exception:  # pragma: no cover - conservative fallback
        return 64 << 20


def _pick_tile_rows(n, bytes_per_row, *, max_rows):
    """Largest row-tile (multiple of 8) whose double-buffered input blocks fit
    in ~45% of physical VMEM (v5e/v6e 128 MiB and v7x 64 MiB both covered)."""
    budget = int(_vmem_capacity_bytes() * 0.45)
    cap = max(8, budget // max(1, 2 * bytes_per_row))  # 2 = double buffering
    tn = min(max_rows, cap, _round_up(n, 8))
    return max(8, (tn // 8) * 8)


def _vmem_limit(block_bytes):
    phys = _vmem_capacity_bytes()
    return int(min(phys - (4 << 20), max(block_bytes + (16 << 20), 32 << 20)))


# ----------------------------- Pallas kernels -----------------------------

def _wce_kernel(logits_ref, tgt_ref, weight_ref, out_ref, *, n_rows, tile_rows):
    """Per-tile weighted NLL partials: out[0,0,0]=sum w[y]*(lse-logit[y]),
    out[0,0,1]=sum w[y].  Tail (out-of-bounds) rows are masked by row iota."""
    logits = logits_ref[...].astype(jnp.float32)       # [tn, C]
    tgt = tgt_ref[...]                                  # [tn, 1] int32
    w = weight_ref[...].astype(jnp.float32)             # [1, C]
    tn, c = logits.shape

    row = (jax.lax.broadcasted_iota(jnp.int32, (tn, 1), 0)
           + pl.program_id(0) * tile_rows)
    valid = row < n_rows                                 # [tn, 1] bool

    cols = jax.lax.broadcasted_iota(jnp.int32, (tn, c), 1)
    onehot = (cols == tgt).astype(jnp.float32)           # [tn, C]

    m = jnp.max(logits, axis=-1, keepdims=True)
    lse = m + jnp.log(jnp.sum(jnp.exp(logits - m), axis=-1, keepdims=True))
    picked = jnp.sum(logits * onehot, axis=-1, keepdims=True)
    wrow = jnp.where(valid,
                     jnp.sum(w * onehot, axis=-1, keepdims=True), 0.0)
    nll = jnp.where(valid, wrow * (lse - picked), 0.0)    # NaN-safe for tail

    nll_sum = jnp.sum(nll)
    w_sum = jnp.sum(wrow)

    sub = jax.lax.broadcasted_iota(jnp.int32, (8, 128), 0)
    lane = jax.lax.broadcasted_iota(jnp.int32, (8, 128), 1)
    blk = jnp.where((sub == 0) & (lane == 0), nll_sum,
                    jnp.where((sub == 0) & (lane == 1), w_sum, 0.0))
    out_ref[...] = blk[None]


def weighted_cross_entropy(logits, targets, weight, *, max_tile_rows=1024):
    """logits [N, C], targets [N] int, weight [C] -> scalar weighted-mean CE
    (matches F.cross_entropy(..., weight=weight, reduction='mean'))."""
    n, c = logits.shape
    itemsize = jnp.dtype(logits.dtype).itemsize
    row_bytes = c * itemsize + 4                         # logits row + int32 tgt
    tn = _pick_tile_rows(n, row_bytes, max_rows=max_tile_rows)
    num_tiles = pl.cdiv(n, tn)

    tgt = targets.astype(jnp.int32).reshape(n, 1)
    w2d = weight.astype(jnp.float32).reshape(1, c)

    block_bytes = 2 * tn * row_bytes + c * 4 + 2 * 8 * 128 * 4
    cost = pl.CostEstimate(
        flops=int(8 * n * c),
        transcendentals=int(n * (c + 1)),
        bytes_accessed=int(n * c * itemsize + n * 4 + c * 4
                           + num_tiles * 8 * 128 * 4),
    )

    kernel = functools.partial(_wce_kernel, n_rows=n, tile_rows=tn)
    partials = pl.pallas_call(
        kernel,
        out_shape=jax.ShapeDtypeStruct((num_tiles, 8, 128), jnp.float32),
        grid_spec=pltpu.PrefetchScalarGridSpec(
            num_scalar_prefetch=0,
            grid=(num_tiles,),
            in_specs=[pl.BlockSpec((tn, c), lambda i: (i, 0)),
                      pl.BlockSpec((tn, 1), lambda i: (i, 0)),
                      pl.BlockSpec((1, c), lambda i: (0, 0))],
            out_specs=pl.BlockSpec((1, 8, 128), lambda i: (i, 0, 0))),
        compiler_params=pltpu.CompilerParams(
            dimension_semantics=("parallel",),
            vmem_limit_bytes=_vmem_limit(block_bytes)),
        cost_estimate=cost,
    )(logits, tgt, w2d)

    num = jnp.sum(partials[:, 0, 0])
    den = jnp.sum(partials[:, 0, 1])
    return num / den


def _mask_loss_kernel(logit_ref, label_ref, out_ref, *, n_rows, tile_rows):
    """Per-tile partials: out[0,0,0]=sum over valid rows of mean-P sigmoid-CE,
    out[0,0,1]=sum of dice loss.  Tail rows masked by row iota."""
    x = logit_ref[...].astype(jnp.float32)               # [tn, P]
    y = label_ref[...].astype(jnp.float32)                # [tn, P]
    tn, p = x.shape

    row = (jax.lax.broadcasted_iota(jnp.int32, (tn, 1), 0)
           + pl.program_id(0) * tile_rows)
    valid = row < n_rows                                   # [tn, 1] bool

    # binary_cross_entropy_with_logits, reduction='none':
    #   max(x, 0) - x*y + log1p(exp(-|x|)); exp(-|x|) reused for sigmoid.
    e = jnp.exp(-jnp.abs(x))
    bce = jnp.maximum(x, 0.0) - x * y + jnp.log1p(e)
    ce_rows = jnp.sum(bce, axis=-1, keepdims=True) * (1.0 / p)

    # exact sigmoid from e:  x>=0 -> 1/(1+e),  x<0 -> e/(1+e)
    r = pl.reciprocal(1.0 + e, approx=False)
    s = jnp.where(x >= 0.0, r, e * r)

    numer = 2.0 * jnp.sum(s * y, axis=-1, keepdims=True)
    denom = jnp.sum(s + y, axis=-1, keepdims=True)         # single reduction
    dice_rows = 1.0 - (numer + 1.0) / (denom + 1.0)

    ce_sum = jnp.sum(jnp.where(valid, ce_rows, 0.0))
    dice_sum = jnp.sum(jnp.where(valid, dice_rows, 0.0))

    sub = jax.lax.broadcasted_iota(jnp.int32, (8, 128), 0)
    lane = jax.lax.broadcasted_iota(jnp.int32, (8, 128), 1)
    blk = jnp.where((sub == 0) & (lane == 0), ce_sum,
                    jnp.where((sub == 0) & (lane == 1), dice_sum, 0.0))
    out_ref[...] = blk[None]


def mask_losses(point_logits, point_labels, num_masks, *, max_tile_rows=256):
    """point_logits/point_labels [N, P] -> (sigmoid_ce_loss, dice_loss)."""
    n, p = point_logits.shape
    itemsize = jnp.dtype(point_logits.dtype).itemsize
    labels = point_labels.astype(point_logits.dtype)       # no padded copies
    row_bytes = 2 * p * itemsize                            # both input arrays
    tn = _pick_tile_rows(n, row_bytes, max_rows=max_tile_rows)
    num_tiles = pl.cdiv(n, tn)

    block_bytes = 2 * tn * row_bytes + 2 * 8 * 128 * 4
    cost = pl.CostEstimate(
        flops=int(13 * n * p),
        transcendentals=int(3 * n * p),
        bytes_accessed=int(2 * n * p * itemsize + num_tiles * 8 * 128 * 4),
    )

    kernel = functools.partial(_mask_loss_kernel, n_rows=n, tile_rows=tn)
    partials = pl.pallas_call(
        kernel,
        out_shape=jax.ShapeDtypeStruct((num_tiles, 8, 128), jnp.float32),
        grid_spec=pltpu.PrefetchScalarGridSpec(
            num_scalar_prefetch=0,
            grid=(num_tiles,),
            in_specs=[pl.BlockSpec((tn, p), lambda i: (i, 0)),
                      pl.BlockSpec((tn, p), lambda i: (i, 0))],
            out_specs=pl.BlockSpec((1, 8, 128), lambda i: (i, 0, 0))),
        compiler_params=pltpu.CompilerParams(
            dimension_semantics=("parallel",),
            vmem_limit_bytes=_vmem_limit(block_bytes)),
        cost_estimate=cost,
    )(point_logits, labels)

    inv_nm = 1.0 / jnp.asarray(num_masks, jnp.float32)
    loss_mask = jnp.sum(partials[:, 0, 0]) * inv_nm
    loss_dice = jnp.sum(partials[:, 0, 1]) * inv_nm
    return loss_mask, loss_dice


# --------------------------- JAX glue (non-hot-path) -----------------------

def calculate_uncertainty(logits):
    assert logits.shape[1] == 1
    return -jnp.abs(logits)


def _bilinear_sample_one(img, coords):
    """img [C, H, W], coords [P, 2] in [0,1] -> [C, P].
    Matches F.grid_sample(mode='bilinear', padding_mode='zeros',
    align_corners=False) with grid = 2*coords - 1 (x=width, y=height)."""
    C, H, W = img.shape
    flat = img.reshape(C, H * W)

    x = coords[:, 0] * W - 0.5
    y = coords[:, 1] * H - 0.5
    x0f = jnp.floor(x)
    y0f = jnp.floor(y)
    wx1 = x - x0f
    wy1 = y - y0f
    wx0 = 1.0 - wx1
    wy0 = 1.0 - wy1
    x0 = x0f.astype(jnp.int32)
    y0 = y0f.astype(jnp.int32)
    x1 = x0 + 1
    y1 = y0 + 1

    def corner(ix, iy, w):
        valid = (ix >= 0) & (ix < W) & (iy >= 0) & (iy < H)
        ixc = jnp.clip(ix, 0, W - 1)
        iyc = jnp.clip(iy, 0, H - 1)
        return iyc * W + ixc, jnp.where(valid, w, 0.0)

    i00, w00 = corner(x0, y0, wx0 * wy0)
    i10, w10 = corner(x1, y0, wx1 * wy0)
    i01, w01 = corner(x0, y1, wx0 * wy1)
    i11, w11 = corner(x1, y1, wx1 * wy1)

    idx = jnp.stack([i00, i10, i01, i11], axis=0)            # [4, P]
    wts = jnp.stack([w00, w10, w01, w11], axis=0)            # [4, P]
    gathered = jnp.take(flat, idx.reshape(-1), axis=1).reshape(C, 4, -1)
    return jnp.einsum('cfp,fp->cp', gathered, wts.astype(img.dtype))


def point_sample(inputs, point_coords):
    """inputs [N, C, H, W], point_coords [N, P, 2] in [0,1] -> [N, C, P]."""
    # TODO(synk): fuse this gather into the mask-loss Pallas kernel (masks in
    # HBM via pl.ANY + manual DMA + in-VMEM 4-corner gather).
    return jax.vmap(_bilinear_sample_one)(inputs, point_coords)


def get_uncertain_point_coords_with_randomness(coarse_logits, uncertainty_fn,
                                               num_points, oversample_ratio,
                                               importance_sample_ratio, key):
    num_boxes = coarse_logits.shape[0]
    num_sampled = int(num_points * oversample_ratio)
    k1, k2 = jax.random.split(key)
    point_coords = jax.random.uniform(k1, (num_boxes, num_sampled, 2),
                                      jnp.float32)
    point_logits = point_sample(coarse_logits, point_coords)   # [N, 1, S]
    point_uncertainties = uncertainty_fn(point_logits)         # [N, 1, S]
    num_uncertain_points = int(importance_sample_ratio * num_points)
    num_random_points = num_points - num_uncertain_points
    _, idx = jax.lax.top_k(point_uncertainties[:, 0, :], num_uncertain_points)
    picked = jnp.take_along_axis(point_coords, idx[:, :, None], axis=1)
    if num_random_points > 0:
        rand = jax.random.uniform(k2, (num_boxes, num_random_points, 2),
                                  jnp.float32)
        picked = jnp.concatenate([picked, rand], axis=1)
    return picked


class IdentityMatcher:
    """Deterministic stand-in for the Hungarian matcher (injected dependency)."""

    def __init__(self, num_targets):
        self.num_targets = num_targets

    def __call__(self, outputs, targets):
        indices = []
        for t in targets:
            n = t['labels'].shape[0]
            indices.append((jnp.arange(n, dtype=jnp.int32),
                            jnp.arange(n, dtype=jnp.int32)))
        return indices


class SetCriterion:
    def __init__(self, num_classes, matcher, weight_dict, eos_coef, losses,
                 num_points, oversample_ratio, importance_sample_ratio):
        self.num_classes = num_classes
        self.matcher = matcher
        self.weight_dict = weight_dict
        self.eos_coef = eos_coef
        self.losses = losses
        self.empty_weight = jnp.ones((num_classes + 1,), jnp.float32).at[-1].set(
            jnp.float32(eos_coef))
        self.num_points = num_points
        self.oversample_ratio = oversample_ratio
        self.importance_sample_ratio = importance_sample_ratio

    # ---- permutation index helpers ----
    def _get_src_permutation_idx(self, indices):
        batch_idx = jnp.concatenate(
            [jnp.full(src.shape, i, jnp.int32) for i, (src, _) in enumerate(indices)])
        src_idx = jnp.concatenate([src for src, _ in indices]).astype(jnp.int32)
        return batch_idx, src_idx

    def _get_tgt_permutation_idx(self, indices):
        batch_idx = jnp.concatenate(
            [jnp.full(tgt.shape, i, jnp.int32) for i, (_, tgt) in enumerate(indices)])
        tgt_idx = jnp.concatenate([tgt for _, tgt in indices]).astype(jnp.int32)
        return batch_idx, tgt_idx

    # ---- losses ----
    def loss_labels(self, outputs, targets, indices, num_masks, key):
        src_logits = outputs['pred_logits']            # kernel casts to f32
        B, Q, _ = src_logits.shape
        target_classes = jnp.full((B, Q), self.num_classes, jnp.int32)
        for i, (src, tgt) in enumerate(indices):
            cls = targets[i]['labels'][tgt].astype(jnp.int32)
            target_classes = target_classes.at[i, src].set(cls)
        loss_ce = weighted_cross_entropy(src_logits.reshape(B * Q, -1),
                                         target_classes.reshape(-1),
                                         self.empty_weight)
        return {'loss_ce': loss_ce}

    def loss_masks(self, outputs, targets, indices, num_masks, key):
        src_masks = outputs['pred_masks']                       # [B, Q, H, W]
        b_src, i_src = self._get_src_permutation_idx(indices)
        b_tgt, i_tgt = self._get_tgt_permutation_idx(indices)
        src_m = src_masks[b_src, i_src]                         # [N, H, W]
        # all targets share the same (T, H, W) here, so no nested-tensor padding
        target_masks_all = jnp.stack([t['masks'] for t in targets])  # [B,T,H,W]
        tgt_m = target_masks_all[b_tgt, i_tgt].astype(src_m.dtype)   # [N, H, W]
        src_m = src_m[:, None]                                  # [N, 1, H, W]
        tgt_m = tgt_m[:, None]
        point_coords = get_uncertain_point_coords_with_randomness(
            src_m, calculate_uncertainty, self.num_points,
            self.oversample_ratio, self.importance_sample_ratio, key)
        point_coords = jax.lax.stop_gradient(point_coords)
        point_labels = jax.lax.stop_gradient(
            point_sample(tgt_m, point_coords)[:, 0, :])          # [N, P]
        point_logits = point_sample(src_m, point_coords)[:, 0, :]
        loss_mask, loss_dice = mask_losses(point_logits, point_labels, num_masks)
        return {'loss_mask': loss_mask, 'loss_dice': loss_dice}

    def get_loss(self, loss, outputs, targets, indices, num_masks, key):
        loss_map = {'labels': self.loss_labels, 'masks': self.loss_masks}
        assert loss in loss_map, f'do you really want to compute {loss} loss?'
        return loss_map[loss](outputs, targets, indices, num_masks, key)

    def forward(self, outputs, targets, key):
        outputs_without_aux = {k: v for k, v in outputs.items()
                               if k != 'aux_outputs'}
        indices = self.matcher(outputs_without_aux, targets)
        num_masks = sum(int(t['labels'].shape[0]) for t in targets)
        num_masks = max(float(num_masks), 1.0)  # world_size == 1 (no dist)
        losses = {}
        for li, loss in enumerate(self.losses):
            losses.update(self.get_loss(loss, outputs, targets, indices,
                                        num_masks, jax.random.fold_in(key, li)))
        if 'aux_outputs' in outputs:
            for i, aux_outputs in enumerate(outputs['aux_outputs']):
                indices = self.matcher(aux_outputs, targets)
                for li, loss in enumerate(self.losses):
                    l_dict = self.get_loss(
                        loss, aux_outputs, targets, indices, num_masks,
                        jax.random.fold_in(key, 1000 * (i + 1) + li))
                    losses.update({k + f'_{i}': v for k, v in l_dict.items()})
        return losses


# ---------------------------------- demo -----------------------------------

if __name__ == "__main__":
    B, Q, C, H, W, T = 2, 8, 4, 16, 16, 3
    key = jax.random.PRNGKey(0)
    k_logits, k_masks, k_tgt, k_fwd = jax.random.split(key, 4)

    pred_logits = jax.random.normal(k_logits, (B, Q, C + 1), jnp.float32)
    pred_masks = 2.0 * jax.random.normal(k_masks, (B, Q, H, W), jnp.float32)

    targets = []
    for b in range(B):
        kb_lab, kb_msk = jax.random.split(jax.random.fold_in(k_tgt, b))
        labels = jax.random.randint(kb_lab, (T,), 0, C, dtype=jnp.int32)
        masks = (jax.random.uniform(kb_msk, (T, H, W)) > 0.5).astype(jnp.float32)
        targets.append({'labels': labels, 'masks': masks})

    criterion = SetCriterion(
        num_classes=C,
        matcher=IdentityMatcher(T),
        weight_dict={'loss_ce': 1.0, 'loss_mask': 20.0, 'loss_dice': 1.0},
        eos_coef=0.1,
        losses=['labels', 'masks'],
        num_points=32,
        oversample_ratio=3.0,
        importance_sample_ratio=0.75,
    )

    losses = criterion.forward(
        {'pred_logits': pred_logits, 'pred_masks': pred_masks}, targets, k_fwd)

    for v in losses.values():
        jax.block_until_ready(v)
    assert all(bool(jnp.isfinite(v)) for v in losses.values())
    print("KERNEL_OK")
</pallas_src>

<mosaic_0001>
module attributes {stable_mosaic.version = 11 : i64} {
  func.func @_wce_kernel(%arg0: i32, %arg1: memref<16x5xf32, #tpu.memory_space<vmem>>, %arg2: memref<16x1xi32, #tpu.memory_space<vmem>>, %arg3: memref<1x5xf32, #tpu.memory_space<vmem>>, %arg4: memref<1x8x128xf32, #tpu.memory_space<vmem>>) attributes {dimension_semantics = [#tpu.dimension_semantics<parallel>], iteration_bounds = array<i64: 1>, scalar_prefetch = 0 : i64, scratch_operands = 0 : i64, tpu.core_type = #tpu.core_type<tc>, window_params = [{transform_indices = @transform_0, window_bounds = array<i64: 16, 5>}, {transform_indices = @transform_1, window_bounds = array<i64: 16, 1>}, {pipeline_mode = #tpu.pipeline_mode<synchronous>, transform_indices = @transform_2, window_bounds = array<i64: 1, 5>}, {transform_indices = @transform_3, window_bounds = array<i64: 1, 8, 128>}]} {
    %c0 = arith.constant 0 : index
    %c0_0 = arith.constant 0 : index
    %0 = vector.load %arg1[%c0, %c0_0] : memref<16x5xf32, #tpu.memory_space<vmem>>, vector<16x5xf32>
    %c0_1 = arith.constant 0 : index
    %c0_2 = arith.constant 0 : index
    %1 = vector.load %arg2[%c0_1, %c0_2] : memref<16x1xi32, #tpu.memory_space<vmem>>, vector<16x1xi32>
    %c0_3 = arith.constant 0 : index
    %c0_4 = arith.constant 0 : index
    %2 = vector.load %arg3[%c0_3, %c0_4] : memref<1x5xf32, #tpu.memory_space<vmem>>, vector<1x5xf32>
    %3 = tpu.iota {dimensions = array<i32: 0>} : vector<16x1xi32>
    %c16_i32 = arith.constant 16 : i32
    %4 = arith.muli %arg0, %c16_i32 : i32
    %5 = vector.broadcast %4 : i32 to vector<16x1xi32>
    %6 = arith.addi %3, %5 : vector<16x1xi32>
    %c16_i32_5 = arith.constant 16 : i32
    %7 = vector.broadcast %c16_i32_5 : i32 to vector<16x1xi32>
    %8 = arith.cmpi slt, %6, %7 : vector<16x1xi32>
    %9 = tpu.iota {dimensions = array<i32: 1>} : vector<16x5xi32>
    %10 = vector.broadcast %1 : vector<16x1xi32> to vector<16x5xi32>
    %11 = arith.cmpi eq, %9, %10 : vector<16x5xi32>
    %12 = arith.extui %11 : vector<16x5xi1> to vector<16x5xi32>
    %13 = arith.sitofp %12 : vector<16x5xi32> to vector<16x5xf32>
    %cst = arith.constant dense<0xFF800000> : vector<16xf32>
    %14 = vector.multi_reduction <maximumf>, %0, %cst [1] : vector<16x5xf32> to vector<16xf32>
    %15 = vector.shape_cast %14 : vector<16xf32> to vector<16x1xf32>
    %16 = vector.broadcast %15 : vector<16x1xf32> to vector<16x5xf32>
    %17 = arith.subf %0, %16 : vector<16x5xf32>
    %18 = math.exp %17 : vector<16x5xf32>
    %cst_6 = arith.constant dense<0.000000e+00> : vector<16xf32>
    %19 = vector.multi_reduction <add>, %18, %cst_6 [1] : vector<16x5xf32> to vector<16xf32>
    %20 = vector.shape_cast %19 : vector<16xf32> to vector<16x1xf32>
    %21 = math.log %20 : vector<16x1xf32>
    %22 = arith.addf %15, %21 : vector<16x1xf32>
    %23 = arith.mulf %0, %13 : vector<16x5xf32>
    %cst_7 = arith.constant dense<0.000000e+00> : vector<16xf32>
    %24 = vector.multi_reduction <add>, %23, %cst_7 [1] : vector<16x5xf32> to vector<16xf32>
    %25 = vector.shape_cast %24 : vector<16xf32> to vector<16x1xf32>
    %26 = vector.broadcast %2 : vector<1x5xf32> to vector<16x5xf32>
    %27 = arith.mulf %26, %13 : vector<16x5xf32>
    %cst_8 = arith.constant dense<0.000000e+00> : vector<16xf32>
    %28 = vector.multi_reduction <add>, %27, %cst_8 [1] : vector<16x5xf32> to vector<16xf32>
    %29 = vector.shape_cast %28 : vector<16xf32> to vector<16x1xf32>
    %cst_9 = arith.constant 0.000000e+00 : f32
    %30 = vector.broadcast %cst_9 : f32 to vector<16x1xf32>
    %31 = arith.select %8, %29, %30 : vector<16x1xi1>, vector<16x1xf32>
    %32 = arith.subf %22, %25 : vector<16x1xf32>
    %33 = arith.mulf %31, %32 : vector<16x1xf32>
    %cst_10 = arith.constant 0.000000e+00 : f32
    %34 = vector.broadcast %cst_10 : f32 to vector<16x1xf32>
    %35 = arith.select %8, %33, %34 : vector<16x1xi1>, vector<16x1xf32>
    %36 = vector.shape_cast %35 : vector<16x1xf32> to vector<1x16x1xf32>
    %cst_11 = arith.constant dense<0.000000e+00> : vector<1xf32>
    %37 = vector.multi_reduction <add>, %36, %cst_11 [1, 2] : vector<1x16x1xf32> to vector<1xf32>
    %38 = vector.shape_cast %37 : vector<1xf32> to vector<1x1x1xf32>
    %39 = vector.extract %38[0, 0, 0] : f32 from vector<1x1x1xf32>
    %40 = vector.shape_cast %31 : vector<16x1xf32> to vector<1x16x1xf32>
    %cst_12 = arith.constant dense<0.000000e+00> : vector<1xf32>
    %41 = vector.multi_reduction <add>, %40, %cst_12 [1, 2] : vector<1x16x1xf32> to vector<1xf32>
    %42 = vector.shape_cast %41 : vector<1xf32> to vector<1x1x1xf32>
    %43 = vector.extract %42[0, 0, 0] : f32 from vector<1x1x1xf32>
    %44 = tpu.iota {dimensions = array<i32: 0>} : vector<8x128xi32>
    %45 = tpu.iota {dimensions = array<i32: 1>} : vector<8x128xi32>
    %c0_i32 = arith.constant 0 : i32
    %46 = vector.broadcast %c0_i32 : i32 to vector<8x128xi32>
    %47 = arith.cmpi eq, %44, %46 : vector<8x128xi32>
    %c0_i32_13 = arith.constant 0 : i32
    %48 = vector.broadcast %c0_i32_13 : i32 to vector<8x128xi32>
    %49 = arith.cmpi eq, %45, %48 : vector<8x128xi32>
    %50 = arith.andi %47, %49 : vector<8x128xi1>
    %c0_i32_14 = arith.constant 0 : i32
    %51 = vector.broadcast %c0_i32_14 : i32 to vector<8x128xi32>
    %52 = arith.cmpi eq, %44, %51 : vector<8x128xi32>
    %c1_i32 = arith.constant 1 : i32
    %53 = vector.broadcast %c1_i32 : i32 to vector<8x128xi32>
    %54 = arith.cmpi eq, %45, %53 : vector<8x128xi32>
    %55 = arith.andi %52, %54 : vector<8x128xi1>
    %cst_15 = arith.constant 0.000000e+00 : f32
    %56 = vector.broadcast %43 : f32 to vector<8x128xf32>
    %57 = vector.broadcast %cst_15 : f32 to vector<8x128xf32>
    %58 = arith.select %55, %56, %57 : vector<8x128xi1>, vector<8x128xf32>
    %59 = vector.broadcast %39 : f32 to vector<8x128xf32>
    %60 = arith.select %50, %59, %58 : vector<8x128xi1>, vector<8x128xf32>
    %61 = vector.shape_cast %60 : vector<8x128xf32> to vector<1x8x128xf32>
    %c0_16 = arith.constant 0 : index
    %c0_17 = arith.constant 0 : index
    %c0_18 = arith.constant 0 : index
    %62 = vector.load %arg4[%c0_16, %c0_17, %c0_18] : memref<1x8x128xf32, #tpu.memory_space<vmem>>, vector<1x8x128xf32>
    tpu.vector_store %arg4[%c0_16, %c0_17, %c0_18], %61 {strides = array<i32>} : memref<1x8x128xf32, #tpu.memory_space<vmem>>, vector<1x8x128xf32>,
    return
  }
  func.func @transform_0(%arg0: i32) -> (i32, i32) {
    %c0_i32 = arith.constant 0 : i32
    %c0_i32_0 = arith.constant 0 : i32
    return %arg0, %c0_i32 : i32, i32
  }
  func.func @transform_1(%arg0: i32) -> (i32, i32) {
    %c0_i32 = arith.constant 0 : i32
    %c0_i32_0 = arith.constant 0 : i32
    return %arg0, %c0_i32 : i32, i32
  }
  func.func @transform_2(%arg0: i32) -> (i32, i32) {
    %c0_i32 = arith.constant 0 : i32
    %c0_i32_0 = arith.constant 0 : i32
    %c0_i32_1 = arith.constant 0 : i32
    return %c0_i32, %c0_i32_0 : i32, i32
  }
  func.func @transform_3(%arg0: i32) -> (i32, i32, i32) {
    %c0_i32 = arith.constant 0 : i32
    %c0_i32_0 = arith.constant 0 : i32
    %c0_i32_1 = arith.constant 0 : i32
    return %arg0, %c0_i32, %c0_i32_0 : i32, i32, i32
  }
}

</mosaic_0001>

<bundles_post_ra>
// kernel: tpu_custom_call.1
= control target key start
LH: loop header
LB: loop body
LE: loop exit
PB: predicated region body
PF: predicated region fallthrough
CT: control target
= control target key end

     0   :  { %vm43_vm0 = vcmask 39936   ;;  %v192_v3 = vmov 0   ;;  %s253_s0 = inlined_call_operand.vmem [shape: f32[16,5], index: 0, kind: input, shape index: {}]   ;;  %s254_s1 = inlined_call_operand.vmem [shape: s32[16,1], index: 1, kind: input, shape index: {}]   ;;  %s255_s2 = inlined_call_operand.vmem [shape: f32[1,5], index: 2, kind: input, shape index: {}]   ;;  %s256_s3 = inlined_call_operand.hbm [shape: f32[1,8,128], index: 3, kind: output, shape index: {}]  }
   0x1   :  { %v15_v0 = vld [vmem:[%s253_s0] sm:$0xff]  ;;  %155 = vset.pattern.permute.xlu1 %v192_v3  ;;  %156 = vset.pattern.permute.xlu0 %v192_v3 }
   0x2   :  { %v17_v1 = vld [vmem:[%s254_s1] sm:$0xff]  ;;  %v44_v2 = vsel %vm43_vm0, %v15_v0, -inf }
   0x3   :  { %45 = vmax.xlane.f32.xlu0 %v44_v2  ;;  %32 = vperm.xlu1 %155, %v17_v1  }
   0x4   :  { %8 = vsyncpa [#allocation3], 0  ;;  %v16_v4 = vld [vmem:[%s253_s0 + $0x8] sm:$0xff]  ;;  %v20_v7 = vlaneseq  ;;  %v193_v12 = vmov 0.0   ;;  %v157_v17 = vld [vmem:[%s255_s2] ss:$0 sm:$0xff] }
   0x5   :  { %v47_v5 = vsel %vm43_vm0, %v16_v4, -inf  ;;  %v18_v6 = vld [vmem:[%s254_s1 + $0x8] sm:$0xff]  ;;  %vm95_vm3 = vcmask 7168   ;;  %s194_s2 = smov [#allocation2]   ;;  %s137_s24 = sshll.u32 %s256_s3, 4  ;;  %s138_s24 = int_to_ptr.hbm [resolvable:$true] %s137_s24 }
   0x6   :  { %v230_v8 = vand.u32 127, %v20_v7  ;;  %s135_s20 = sshll.u32 %s194_s2, 4  ;;  %s136_s20 = int_to_ptr.vmem [resolvable:$true] %s135_s20 }
   0x8   :  { %vm123_vm5 = vcmp.eq.s32.totalorder %v230_v8, 1  ;;  %vm121_vm6 = vcmp.eq.s32.totalorder %v230_v8, 0 }
   0xb   :  { %48 = vmax.xlane.f32.xlu0 %v47_v5  ;;  %35 = vperm.xlu1 %155, %v18_v6   ;;  %v21_v5 = vshrl.u32 %v20_v7, 7 }
   0xd   :  { %vm120_vm4 = vcmp.eq.s32.totalorder %v21_v5, 0 }
   0xe   :  { %vm124_vm7 = vmand %vm120_vm4, %vm123_vm5 }
   0xf   :  { %vm122_vm8 = vmand %vm120_vm4, %vm121_vm6 }
  0x75   :  { %v33_v9 = vpop.permute.xlu1 %32 }
  0x76   :  { %v46_v10 = vpop.xlane.xlu0 %45  ;;  %vm37_vm1 = vcmp.eq.s32.totalorder %v230_v8, %v33_v9 }
  0x77   :  { %v50_v11 = vsub.f32 %v15_v0, %v46_v10  ;;  %v146_v13 = vsel %vm37_vm1, 1.0, %v193_v12 }
  0x78   :  { %v68_v14 = vmul.f32 %v146_v13, %v15_v0  ;;  %v79_v31 = vmul.f32 %v157_v17, %v146_v13 }
  0x79   :  { %v52_v15 = vmul.f32 1.442695, %v50_v11 }
  0x7a   :  { %v70_v16 = vsel %vm43_vm0, %v68_v14, 0.0  ;;  %v81_v32 = vsel %vm43_vm0, %v79_v31, 0.0 }
  0x7b   :  { %158 = vpow2.f32 %v52_v15  ;;  %71 = vadd.xlane.f32.xlu0 %v70_v16 }
  0x7d   :  { %v36_v18 = vpop.permute.xlu1 %35 }
  0x7e   :  { %v49_v19 = vpop.xlane.xlu0 %48  ;;  %vm38_vm2 = vcmp.eq.s32.totalorder %v230_v8, %v36_v18 }
  0x7f   :  { %v51_v20 = vsub.f32 %v16_v4, %v49_v19  ;;  %v147_v21 = vsel %vm38_vm2, 1.0, %v193_v12 }
  0x80   :  { %v69_v22 = vmul.f32 %v147_v21, %v16_v4  ;;  %v80_v23 = vmul.f32 %v157_v17, %v147_v21 }
  0x81   :  { %v159_v24 = vpop.eup %158  ;;  %v54_v25 = vmul.f32 1.442695, %v51_v20 }
  0x82   :  { %v56_v26 = vsel %vm43_vm0, %v159_v24, 0.0  ;;  %v73_v27 = vsel %vm43_vm0, %v69_v22, 0.0  ;;  %v84_v28 = vsel %vm43_vm0, %v80_v23, 0.0 }
  0x83   :  { %160 = vpow2.f32 %v54_v25  ;;  %57 = vadd.xlane.f32.xlu2 %v56_v26  ;;  %74 = vadd.xlane.f32.xlu1 %v73_v27 }
  0x84   :  { %85 = vadd.xlane.f32.xlu0 %v84_v28 }
  0x89   :  { %v161_v29 = vpop.eup %160 }
  0x8a   :  { %v59_v30 = vsel %vm43_vm0, %v161_v29, 0.0 }
  0x8b   :  { %60 = vadd.xlane.f32.xlu2 %v59_v30 }
  0x93   :  { %82 = vadd.xlane.f32.xlu2 %v81_v32 }
  0xee   :  { %v72_v34 = vpop.xlane.xlu0 %71 }
  0xf6   :  { %v58_v33 = vpop.xlane.xlu2 %57  ;;  %v75_v48 = vpop.xlane.xlu1 %74 }
  0xf7   :  { %162 = vlog2.f32 %v58_v33  ;;  %v86_v39 = vpop.xlane.xlu0 %85 }
  0xf8   :  { %v109_v43 = vsel %vm95_vm3, %v86_v39, 0.0 }
  0xfd   :  { %v163_v35 = vpop.eup %162 }
  0xfe   :  { %v61_v36 = vpop.xlane.xlu2 %60  ;;  %v63_v37 = vmul.f32 0.6931472, %v163_v35 }
  0xff   :  { %164 = vlog2.f32 %v61_v36 }
 0x100   :  { %v66_v38 = vadd.f32 %v63_v37, %v46_v10 }
 0x102   :  { %v89_v45 = vsub.f32 %v66_v38, %v72_v34 }
 0x105   :  { %v165_v40 = vpop.eup %164 }
 0x106   :  { %v65_v41 = vmul.f32 0.6931472, %v165_v40  ;;  %v83_v42 = vpop.xlane.xlu2 %82 }
 0x107   :  { %v108_v44 = vsel %vm95_vm3, %v83_v42, 0.0  ;;  %v91_v50 = vmul.f32 %v89_v45, %v83_v42 }
 0x108   :  { %v67_v46 = vadd.f32 %v65_v41, %v49_v19  ;;  %v110_v47 = vadd.f32 %v109_v43, %v108_v44 }
 0x109   :  { %v96_v52 = vsel %vm95_vm3, %v91_v50, 0.0 }
 0x10a   :  { %v90_v49 = vsub.f32 %v67_v46, %v75_v48  ;;  %111 = vadd.xlane.f32.xlu0 %v110_v47 }
 0x10c   :  { %v92_v51 = vmul.f32 %v90_v49, %v86_v39 }
 0x10e   :  { %v97_v53 = vsel %vm95_vm3, %v92_v51, 0.0 }
 0x10f   :  { %v98_v54 = vadd.f32 %v97_v53, %v96_v52 }
 0x111   :  { %99 = vadd.xlane.f32.xlu2 %v98_v54 }
 0x17d   :  { %v112_v55 = vpop.xlane.xlu0 %111 }
 0x17e   :  { %v113_v56 = vrot.slane %v112_v55, 4 }
 0x180   :  { %v114_v57 = vadd.f32 %v113_v56, %v112_v55 }
 0x182   :  { %v115_v58 = vrot.slane %v114_v57, 2 }
 0x184   :  { %v100_v59 = vpop.xlane.xlu2 %99  ;;  %v116_v62 = vadd.f32 %v115_v58, %v114_v57 }
 0x185   :  { %v101_v60 = vrot.slane %v100_v59, 4 }
 0x186   :  { %v117_v1 = vrot.slane %v116_v62, 1 }
 0x187   :  { %v102_v61 = vadd.f32 %v101_v60, %v100_v59 }
 0x188   :  { %v118_v4 = vadd.f32 %v117_v1, %v116_v62 }
 0x189   :  { %v103_v63 = vrot.slane %v102_v61, 2 }
 0x18b   :  { %v104_v0 = vadd.f32 %v103_v63, %v102_v61 }
 0x18d   :  { %v105_v2 = vrot.slane %v104_v0, 1 }
 0x18f   :  { %v106_v3 = vadd.f32 %v105_v2, %v104_v0 }
 0x191   :  { %148 = vpush %v106_v3 }
 0x192   :  { %150 = vpush %v118_v4 }
 0x1c2   :  { %s149_s21 = spop %148 }
 0x1c3   :  { %v127_v6 = vstv %s149_s21  ;;  %s151_s25 = spop %150 }
 0x1c4   :  { %v125_v9 = vstv %s151_s25 }
 0x1c5   :  { %v126_v10 = vsel %vm124_vm7, %v125_v9, 0.0 }
 0x1c6   :  { %v128_v7 = vsel %vm122_vm8, %v127_v6, %v126_v10 }
 0x1c7   :  { %129 = vst [vmem:[#allocation2] sm:$0xff] %v128_v7 }
 0x1c8   :  { %140 = dma.vmem_to_hbm [thread:$0]  %s136_s20, 128, %s138_s24, [#allocation3]  }
 0x1c9   :  { %190 = dma.done.wait [#allocation3], 128  }
 0x1ca   :  { %191 = vsyncadd [#allocation3], 4294967168 }
 0x1cb   :  { %145 = vsyncpa [#allocation3], 1 }

</bundles_post_ra>
